<compile_context>
chip_gen: v5e
topology: v5e:2x2
jax: 0.10.0
libtpu: 0.0.40
codegen_flags: <defaults>
</compile_context>

<pallas_src>
import functools

import jax
import jax.numpy as jnp
from jax.experimental import pallas as pl
from jax.experimental.pallas import tpu as pltpu


def _round_up(x, m):
    return ((x + m - 1) // m) * m


def _select_tile(dim, candidates):
    """Pick the tile minimizing padded size; prefer the largest tile on ties."""
    best_t, best_pad = None, None
    for t in candidates:
        padded = _round_up(dim, t)
        if best_pad is None or padded < best_pad or (padded == best_pad and t > best_t):
            best_t, best_pad = t, padded
    return best_t


def _nonlinear_kernel(*refs, activation, has_bias):
    # refs: x, w, [bias], out, acc_scratch
    if has_bias:
        x_ref, w_ref, b_ref, o_ref, acc_ref = refs
    else:
        x_ref, w_ref, o_ref, acc_ref = refs
        b_ref = None

    k = pl.program_id(2)

    @pl.when(k == 0)
    def _():
        if has_bias:
            # Fold the bias into the accumulator init (no epilogue add).
            acc_ref[...] = jnp.broadcast_to(b_ref[...], acc_ref.shape)
        else:
            acc_ref[...] = jnp.zeros_like(acc_ref)

    # Pure MXU accumulate on the hot path (f32 accumulator).
    acc_ref[...] += jnp.dot(
        x_ref[...], w_ref[...], preferred_element_type=jnp.float32
    )

    @pl.when(k == pl.num_programs(2) - 1)
    def _():
        h = acc_ref[...]
        if activation is not None:
            h = activation(h)
        o_ref[...] = h.astype(o_ref.dtype)


def nonlinear_forward(x, weight_t, bias_row, activation, out_size, tn0, tk):
    """x: (..., in).  weight_t: (Kp, Np) pre-transposed / pre-padded / pre-cast.
    bias_row: (1, Np) float32 (zero-padded) or None."""
    orig_lead = x.shape[:-1]
    Kp, Np = weight_t.shape
    compute_dtype = weight_t.dtype
    out_dtype = x.dtype

    x2d = x.reshape(-1, x.shape[-1]).astype(compute_dtype)
    M, K = x2d.shape

    # Per-call M tile: single block if M fits in one 512-row tile, otherwise
    # minimize padded work over lane/sublane-friendly candidates.
    if M <= 512:
        tm = _round_up(max(M, 1), 8)
    else:
        tm = _select_tile(M, (512, 256, 128))
    Mp = _round_up(M, tm)

    # Megacore (v7x has 2 TensorCores): make sure the two "parallel" grid axes
    # expose >= 2 blocks when N allows.  Shrinking tn keeps total padded work
    # identical (Np is fixed and already a multiple of every candidate), so
    # this is essentially neutral on single-core v5e/v6e.
    tn = tn0
    while ((Mp // tm) * (Np // tn) < 2 and tn > 128
           and (tn // 2) % 128 == 0 and Np % (tn // 2) == 0):
        tn //= 2

    # Zero-pad x to (Mp, Kp): zero K-columns contribute nothing to the matmul;
    # padded rows/cols of the output are sliced away below.
    if (M, K) != (Mp, Kp):
        x2d = jnp.pad(x2d, ((0, Mp - M), (0, Kp - K)))

    has_bias = bias_row is not None
    kernel = functools.partial(
        _nonlinear_kernel, activation=activation, has_bias=has_bias)

    grid = (Mp // tm, Np // tn, Kp // tk)

    in_specs = [
        pl.BlockSpec((tm, tk), lambda i, j, k: (i, k)),
        pl.BlockSpec((tk, tn), lambda i, j, k: (k, j)),
    ]
    operands = [x2d, weight_t]
    if has_bias:
        in_specs.append(pl.BlockSpec((1, tn), lambda i, j, k: (0, j)))
        operands.append(bias_row)

    # Footprint (double-buffered tiles + acc) stays <= ~11 MiB for the largest
    # tile config, so the default scoped-VMEM limits on v5e/v6e/v7x all hold
    # without an explicit vmem_limit_bytes override.
    out = pl.pallas_call(
        kernel,
        out_shape=jax.ShapeDtypeStruct((Mp, Np), out_dtype),
        grid_spec=pltpu.PrefetchScalarGridSpec(
            num_scalar_prefetch=0,
            grid=grid,
            in_specs=in_specs,
            out_specs=pl.BlockSpec((tm, tn), lambda i, j, k: (i, j)),
            scratch_shapes=[pltpu.VMEM((tm, tn), jnp.float32)],
        ),
        compiler_params=pltpu.CompilerParams(
            dimension_semantics=("parallel", "parallel", "arbitrary")
        ),
    )(*operands)

    out = out[:M, :out_size]
    return out.reshape(*orig_lead, out_size)


class NonLinearPallas:
    """Mirror of the PyTorch NonLinear module (Linear + optional activation)."""

    def __init__(self, input_size, output_size, bias=True, activation=None,
                 use_bf16=False, key=None):
        if key is None:
            key = jax.random.PRNGKey(0)
        self.input_size = int(input_size)
        self.output_size = int(output_size)
        self.activation = activation
        self.compute_dtype = jnp.bfloat16 if use_bf16 else jnp.float32

        # N/K tile sizes depend only on the layer shape, so pick them once and
        # pad/cast the parameters once here instead of on every forward call.
        self.tn = _select_tile(self.output_size, (512, 256, 128))
        tk_cap = 1024 if use_bf16 else 512
        if self.input_size <= tk_cap:
            self.tk = _round_up(self.input_size, 128)
        else:
            cands, c = [], tk_cap
            while c >= 128:
                cands.append(c)
                c //= 2
            self.tk = _select_tile(self.input_size, tuple(cands))
        self.Np = _round_up(self.output_size, self.tn)
        self.Kp = _round_up(self.input_size, self.tk)

        kw, kb = jax.random.split(key)
        # nn.Linear-style uniform(-1/sqrt(in), 1/sqrt(in)) init.
        bound = 1.0 / (self.input_size ** 0.5)
        w = jax.random.uniform(kw, (self.output_size, self.input_size),
                               jnp.float32, -bound, bound)
        # Single stored layout: (K, N) transposed, zero-padded to (Kp, Np),
        # cast once to the MXU compute dtype (no per-call HBM pass over W).
        wt = jnp.pad(w.T, ((0, self.Kp - self.input_size),
                           (0, self.Np - self.output_size)))
        self.weight_t = jnp.asarray(wt.astype(self.compute_dtype))

        if bias:
            b = jax.random.uniform(kb, (self.output_size,), jnp.float32,
                                   -bound, bound)
            self.bias_row = jnp.pad(
                b, (0, self.Np - self.output_size)).reshape(1, self.Np)
        else:
            self.bias_row = None

    def __call__(self, x):
        return nonlinear_forward(x, self.weight_t, self.bias_row,
                                 self.activation, self.output_size,
                                 self.tn, self.tk)


if __name__ == "__main__":
    key = jax.random.PRNGKey(0)
    kx, kp1, kp2, kp3, kx2, kx3 = jax.random.split(key, 6)

    # 1) f32 path, bias + tanh, small shape.
    batch, input_size, output_size = 8, 32, 16
    x = jax.random.normal(kx, (batch, input_size), dtype=jnp.float32)
    mod = NonLinearPallas(input_size, output_size, bias=True,
                          activation=jnp.tanh, key=kp1)
    out = jax.block_until_ready(mod(x))
    w_eff = mod.weight_t[:input_size, :output_size].astype(jnp.float32)
    b_eff = mod.bias_row[0, :output_size]
    ref = jnp.tanh(x @ w_eff + b_eff)
    assert out.shape == (batch, output_size)
    assert jnp.allclose(out, ref, atol=1e-5, rtol=1e-5)

    # 2) no-bias / no-activation, non-tile-aligned multi-tile shape.
    mod2 = NonLinearPallas(200, 300, bias=False, activation=None, key=kp2)
    x2 = jax.random.normal(kx2, (37, 200), dtype=jnp.float32)
    out2 = jax.block_until_ready(mod2(x2))
    ref2 = x2 @ mod2.weight_t[:200, :300].astype(jnp.float32)
    assert out2.shape == (37, 300)
    assert jnp.allclose(out2, ref2, atol=1e-4, rtol=1e-4)

    # 3) bf16 MXU-input path (f32 accumulation), 3-D input, bias + tanh.
    mod3 = NonLinearPallas(264, 260, bias=True, activation=jnp.tanh,
                           use_bf16=True, key=kp3)
    x3 = jax.random.normal(kx3, (4, 34, 264), dtype=jnp.float32)
    out3 = jax.block_until_ready(mod3(x3))
    w3 = mod3.weight_t[:264, :260].astype(jnp.float32)
    b3 = mod3.bias_row[0, :260]
    x3_bf = x3.astype(jnp.bfloat16).astype(jnp.float32)
    ref3 = jnp.tanh(jnp.einsum("bsk,kn->bsn", x3_bf, w3) + b3)
    assert out3.shape == (4, 34, 260)
    assert jnp.allclose(out3, ref3, atol=1e-2, rtol=1e-2)

    print("KERNEL_OK")
</pallas_src>

<mosaic_0001>
module attributes {stable_mosaic.version = 11 : i64} {
  func.func @_nonlinear_kernel(%arg0: i32, %arg1: i32, %arg2: i32, %arg3: memref<8x128xf32, #tpu.memory_space<vmem>>, %arg4: memref<128x128xf32, #tpu.memory_space<vmem>>, %arg5: memref<1x128xf32, #tpu.memory_space<vmem>>, %arg6: memref<8x128xf32, #tpu.memory_space<vmem>>, %arg7: memref<8x128xf32, #tpu.memory_space<vmem>>) attributes {dimension_semantics = [#tpu.dimension_semantics<parallel>, #tpu.dimension_semantics<parallel>, #tpu.dimension_semantics<arbitrary>], iteration_bounds = array<i64: 1, 1, 1>, scalar_prefetch = 0 : i64, scratch_operands = 1 : i64, tpu.core_type = #tpu.core_type<tc>, window_params = [{transform_indices = @transform_0, window_bounds = array<i64: 8, 128>}, {transform_indices = @transform_1, window_bounds = array<i64: 128, 128>}, {transform_indices = @transform_2, window_bounds = array<i64: 1, 128>}, {transform_indices = @transform_3, window_bounds = array<i64: 8, 128>}]} {
    %c0_i32 = arith.constant 0 : i32
    %0 = arith.cmpi eq, %arg2, %c0_i32 : i32
    %1 = arith.extui %0 : i1 to i32
    %c0_i32_0 = arith.constant 0 : i32
    %2 = arith.cmpi ne, %1, %c0_i32_0 : i32
    scf.if %2 {
      %c0_10 = arith.constant 0 : index
      %c0_11 = arith.constant 0 : index
      %12 = vector.load %arg5[%c0_10, %c0_11] : memref<1x128xf32, #tpu.memory_space<vmem>>, vector<1x128xf32>
      %13 = vector.shape_cast %12 : vector<1x128xf32> to vector<1x128xf32>
      %14 = vector.broadcast %13 : vector<1x128xf32> to vector<8x128xf32>
      %c0_12 = arith.constant 0 : index
      %c0_13 = arith.constant 0 : index
      %15 = vector.load %arg7[%c0_12, %c0_13] : memref<8x128xf32, #tpu.memory_space<vmem>>, vector<8x128xf32>
      tpu.vector_store %arg7[%c0_12, %c0_13], %14 {strides = array<i32>} : memref<8x128xf32, #tpu.memory_space<vmem>>, vector<8x128xf32>,
    } else {
    }
    %c0 = arith.constant 0 : index
    %c0_1 = arith.constant 0 : index
    %3 = vector.load %arg7[%c0, %c0_1] : memref<8x128xf32, #tpu.memory_space<vmem>>, vector<8x128xf32>
    %c0_2 = arith.constant 0 : index
    %c0_3 = arith.constant 0 : index
    %4 = vector.load %arg3[%c0_2, %c0_3] : memref<8x128xf32, #tpu.memory_space<vmem>>, vector<8x128xf32>
    %c0_4 = arith.constant 0 : index
    %c0_5 = arith.constant 0 : index
    %5 = vector.load %arg4[%c0_4, %c0_5] : memref<128x128xf32, #tpu.memory_space<vmem>>, vector<128x128xf32>
    %cst = arith.constant dense<0.000000e+00> : vector<8x128xf32>
    %6 = tpu.matmul %4, %5, %cst {dimension_numbers = #tpu.dot_dimension_numbers<[1], [0], [0], [1], [0, 0, 1, 1], [], []>} : vector<8x128xf32>, vector<128x128xf32>, vector<8x128xf32> -> vector<8x128xf32>
    %7 = arith.addf %3, %6 : vector<8x128xf32>
    %c0_6 = arith.constant 0 : index
    %c0_7 = arith.constant 0 : index
    %8 = vector.load %arg7[%c0_6, %c0_7] : memref<8x128xf32, #tpu.memory_space<vmem>>, vector<8x128xf32>
    tpu.vector_store %arg7[%c0_6, %c0_7], %7 {strides = array<i32>} : memref<8x128xf32, #tpu.memory_space<vmem>>, vector<8x128xf32>,
    %c0_i32_8 = arith.constant 0 : i32
    %9 = arith.cmpi eq, %arg2, %c0_i32_8 : i32
    %10 = arith.extui %9 : i1 to i32
    %c0_i32_9 = arith.constant 0 : i32
    %11 = arith.cmpi ne, %10, %c0_i32_9 : i32
    scf.if %11 {
      %c0_10 = arith.constant 0 : index
      %c0_11 = arith.constant 0 : index
      %12 = vector.load %arg7[%c0_10, %c0_11] : memref<8x128xf32, #tpu.memory_space<vmem>>, vector<8x128xf32>
      %13 = math.tanh %12 : vector<8x128xf32>
      %c0_12 = arith.constant 0 : index
      %c0_13 = arith.constant 0 : index
      %14 = vector.load %arg6[%c0_12, %c0_13] : memref<8x128xf32, #tpu.memory_space<vmem>>, vector<8x128xf32>
      tpu.vector_store %arg6[%c0_12, %c0_13], %13 {strides = array<i32>} : memref<8x128xf32, #tpu.memory_space<vmem>>, vector<8x128xf32>,
    } else {
    }
    return
  }
  func.func @transform_0(%arg0: i32, %arg1: i32, %arg2: i32) -> (i32, i32) {
    %c0_i32 = arith.constant 0 : i32
    return %arg0, %arg2 : i32, i32
  }
  func.func @transform_1(%arg0: i32, %arg1: i32, %arg2: i32) -> (i32, i32) {
    %c0_i32 = arith.constant 0 : i32
    return %arg2, %arg1 : i32, i32
  }
  func.func @transform_2(%arg0: i32, %arg1: i32, %arg2: i32) -> (i32, i32) {
    %c0_i32 = arith.constant 0 : i32
    %c0_i32_0 = arith.constant 0 : i32
    return %c0_i32, %arg1 : i32, i32
  }
  func.func @transform_3(%arg0: i32, %arg1: i32, %arg2: i32) -> (i32, i32) {
    %c0_i32 = arith.constant 0 : i32
    return %arg0, %arg1 : i32, i32
  }
}

</mosaic_0001>

<bundles_post_ra>
// kernel: tpu_custom_call.1
= control target key start
LH: loop header
LB: loop body
LE: loop exit
PB: predicated region body
PF: predicated region fallthrough
CT: control target
= control target key end

     0   :  { %8 = vsyncpa [#allocation4], 0  ;;  %s241_s0 = inlined_call_operand.hbm [shape: f32[8,128], index: 0, kind: input, shape index: {}]   ;;  %s242_s1 = inlined_call_operand.hbm [shape: f32[128,128], index: 1, kind: input, shape index: {}]   ;;  %s243_s2 = inlined_call_operand.vmem [shape: f32[1,128], index: 2, kind: input, shape index: {}]   ;;  %s244_s3 = inlined_call_operand.hbm [shape: f32[8,128], index: 3, kind: output, shape index: {}]  }
   0x1   :  { %9 = vsyncpa [#allocation7], 0 }
   0x2   :  { %10 = vsyncpa [#allocation5], 0  ;;  %s16_s14 = sshll.u32 %s241_s0, 4  ;;  %s204_s15 = smov [#allocation3]   ;;  %s17_s14 = int_to_ptr.hbm [resolvable:$true] %s16_s14 }
   0x3   :  { %s18_s16 = sshll.u32 %s204_s15, 4  ;;  %s26_s19 = sshll.u32 %s242_s1, 4  ;;  %s19_s16 = int_to_ptr.vmem [resolvable:$true] %s18_s16  ;;  %s27_s19 = int_to_ptr.hbm [resolvable:$true] %s26_s19 }
   0x4   :  { %21 = dma.hbm_to_vmem [thread:$0]  %s17_s14, 128, %s19_s16, [#allocation4]  }
   0x5   :  { %s205_s20 = smov [#allocation6]   ;;  %s206_s22 = smov 128  }
   0x6   :  { %s28_s21 = sshll.u32 %s205_s20, 4  ;;  %s207_s23 = smov 8   ;;  %s29_s21 = int_to_ptr.vmem [resolvable:$true] %s28_s21 }
   0x7   :  { %34 = dma.hbm_to_vmem [thread:$0]  %s27_s19, 2048, %s29_s21, [#allocation7], %s206_s22, %s206_s22, %s207_s23  }
   0x8   :  { %198 = dma.done.wait [#allocation4], 128  }
   0x9   :  { %199 = vsyncadd [#allocation4], 4294967168 }
   0xa   :  { %200 = dma.done.wait [#allocation7], 2048  }
   0xb   :  { %201 = vsyncadd [#allocation7], 4294965248  ;;  %v71_v0 = vld [vmem:[#allocation6 + $0x78] sm:$0xff]  ;;  %v70_v1 = vld [vmem:[#allocation6 + $0x70] sm:$0xff]  ;;  %s208_s24 = smov [#allocation8]   ;;  %s107_s28 = sshll.u32 %s244_s3, 4  ;;  %s108_s28 = int_to_ptr.hbm [resolvable:$true] %s107_s28 }
   0xc   :  { %72 = vmatpush.msra.mxu0 %v71_v0  ;;  %v69_v2 = vld [vmem:[#allocation6 + $0x68] sm:$0xff]  ;;  %v68_v3 = vld [vmem:[#allocation6 + $0x60] sm:$0xff]  ;;  %v67_v4 = vld [vmem:[#allocation6 + $0x58] sm:$0xff]  ;;  %s105_s25 = sshll.u32 %s208_s24, 4  ;;  %s106_s25 = int_to_ptr.vmem [resolvable:$true] %s105_s25 }
   0xd   :  { %v66_v5 = vld [vmem:[#allocation6 + $0x50] sm:$0xff]  ;;  %v65_v6 = vld [vmem:[#allocation6 + $0x48] sm:$0xff]  ;;  %v64_v7 = vld [vmem:[#allocation6 + $0x40] sm:$0xff] }
   0xe   :  { %73 = vmatpush.msra.mxu0 %v70_v1  ;;  %v63_v8 = vld [vmem:[#allocation6 + $0x38] sm:$0xff]  ;;  %v62_v9 = vld [vmem:[#allocation6 + $0x30] sm:$0xff]  ;;  %v61_v10 = vld [vmem:[#allocation6 + $0x28] sm:$0xff] }
   0xf   :  { %v60_v11 = vld [vmem:[#allocation6 + $0x20] sm:$0xff]  ;;  %v59_v12 = vld [vmem:[#allocation6 + $0x18] sm:$0xff]  ;;  %v58_v13 = vld [vmem:[#allocation6 + $0x10] sm:$0xff] }
  0x10   :  { %74 = vmatpush.msra.mxu0 %v69_v2  ;;  %v57_v14 = vld [vmem:[#allocation6 + $0x8] sm:$0xff]  ;;  %v56_v15 = vld [vmem:[#allocation6] sm:$0xff]  ;;  %v55_v16 = vld [vmem:[#allocation3] sm:$0xff] }
  0x11   :  { %v123_v17 = vld [vmem:[%s243_s2] ss:$0 sm:$0xff] }
  0x12   :  { %75 = vmatpush.msra.mxu0 %v68_v3 }
  0x14   :  { %76 = vmatpush.msra.mxu0 %v67_v4 }
  0x16   :  { %77 = vmatpush.msra.mxu0 %v66_v5 }
  0x18   :  { %78 = vmatpush.msra.mxu0 %v65_v6 }
  0x1a   :  { %79 = vmatpush.msra.mxu0 %v64_v7 }
  0x1c   :  { %80 = vmatpush.msra.mxu0 %v63_v8 }
  0x1e   :  { %81 = vmatpush.msra.mxu0 %v62_v9 }
  0x20   :  { %82 = vmatpush.msra.mxu0 %v61_v10 }
  0x22   :  { %83 = vmatpush.msra.mxu0 %v60_v11 }
  0x24   :  { %84 = vmatpush.msra.mxu0 %v59_v12 }
  0x26   :  { %85 = vmatpush.msra.mxu0 %v58_v13 }
  0x28   :  { %86 = vmatpush.msra.mxu0 %v57_v14 }
  0x2a   :  { %87 = vmatpush.msra.mxu0 %v56_v15 }
  0x2b   :  { %88 = vmatmul.f32.vlgmr.msra.gmra.mxu0 %v55_v16 }
  0xa8   :  { %v89_v18 = vpop.f32.mrf.mxu0 }
  0xa9   :  { %v92_v19 = vadd.f32 %v123_v17, %v89_v18 }
  0xab   :  { %124 = vtanh.f32 %v92_v19 }
  0xb1   :  { %v125_v20 = vpop.eup %124 }
  0xb2   :  { %99 = vst [vmem:[#allocation8] sm:$0xff] %v125_v20 }
  0xb3   :  { %110 = dma.vmem_to_hbm [thread:$0]  %s106_s25, 128, %s108_s28, [#allocation5]  }
  0xb4   :  { %202 = dma.done.wait [#allocation5], 128  }
  0xb5   :  { %203 = vsyncadd [#allocation5], 4294967168 }
  0xb6   :  { %115 = vsyncpa [#allocation4], 1 }
  0xb7   :  { %116 = vsyncpa [#allocation7], 1 }
  0xb8   :  { %117 = vsyncpa [#allocation5], 1 }

</bundles_post_ra>
